<compile_context>
chip_gen: v7x
topology: tpu7x:2x2x1
jax: 0.10.0
libtpu: 0.0.40
codegen_flags: <defaults>
</compile_context>

<pallas_src>
import jax
import jax.numpy as jnp
from jax.experimental import pallas as pl
from jax.experimental.pallas import tpu as pltpu

_EPS = 1e-5  # torch.nn.InstanceNorm1d default eps


def _binding_core_kernel(s_ref, mask_ref, w_ref, bias_ref, out_ref):
    # Sum of the three LSTM hidden-state summaries.  Inputs may be bf16
    # (halves the dominant HBM read stream); compute stays f32.
    x = (s_ref[0].astype(jnp.float32)
         + s_ref[1].astype(jnp.float32)
         + s_ref[2].astype(jnp.float32))                         # [TB, 2H]

    # InstanceNorm1d(affine=False) over the 2H features of each sample
    # (biased variance, eps=1e-5) -- identical to normalizing a [B,1,2H] view.
    # TODO(synk): if profiling shows vld/VALU near DMA time (2H < 128 uses only
    # 2H/128 lanes here), a feature-major producer layout would fix it.
    mean = jnp.mean(x, axis=-1, keepdims=True)                   # [TB, 1]
    centered = x - mean
    var = jnp.mean(centered * centered, axis=-1, keepdims=True)  # [TB, 1]
    xn = centered * jax.lax.rsqrt(var + _EPS)                    # [TB, 2H]

    # Linear(2H -> L): [TB,2H] x [L,2H]^T -> [TB, L].  M=TB, K=2H, N=L starves
    # the MXU, but its FLOPs are negligible at this arithmetic intensity; the
    # batch-major layout avoids any wrapper transpose pass (the bigger win).
    logits = jax.lax.dot_general(
        xn, w_ref[...],
        dimension_numbers=(((1,), (1,)), ((), ())),
        preferred_element_type=jnp.float32)                      # [TB, L]
    logits = logits + bias_ref[...]                              # bias [1,L] bcast

    # torch.where(seq_mask != 0, logits, 0.0): masked positions become 0.0
    # (NOT -inf), exactly as in the reference module.
    masked = jnp.where(mask_ref[...] != 0, logits, 0.0)          # [TB, L]

    # Softmax over the sequence dimension.  Exact divide: approx reciprocal
    # (~2^-8) broke row-sum==1 and buys nothing on a memory-bound kernel.
    m = jnp.max(masked, axis=-1, keepdims=True)                  # [TB, 1]
    e = jnp.exp(masked - m)
    denom = jnp.sum(e, axis=-1, keepdims=True)                   # [TB, 1]
    out_ref[...] = (e / denom).astype(out_ref.dtype)


def _vmem_budget_and_limit():
    """Generation-specific VMEM sizing (v5e/v6e: 128 MiB, v7x: 64 MiB/TC)."""
    try:
        cap = int(pltpu.get_tpu_info().vmem_capacity_bytes)
    except Exception:
        cap = 64 * 1024 * 1024          # conservative (v7x-sized) fallback
    budget = min((cap * 55) // 100, 80 * 1024 * 1024)   # double-buffered blocks
    limit = min((cap * 3) // 4, 112 * 1024 * 1024)      # scoped-VMEM ceiling
    return budget, limit


def _choose_batch_tile(batch, two_h, seq_len, in_itemsize, budget):
    """Pick the batch tile TB from the VMEM budget.

    Double-buffered VMEM bytes per batch row (minor dims are padded to the
    128-lane tile in VMEM; HBM traffic is unaffected):
      inputs  3 * pad128(2H) * itemsize,  mask pad128(L) * 1,  out pad128(L) * 4
    """
    pad = lambda n: ((n + 127) // 128) * 128
    per_row = 2 * (3 * pad(two_h) * in_itemsize + pad(seq_len) * (1 + 4))
    tb = int(min(budget // max(per_row, 1), 8192))
    # Give v7x's two TensorCores at least two grid steps to split across
    # (axis is marked "parallel"); harmless no-op on v5e/v6e (single TC).
    if batch >= 256:
        half = ((batch + 1) // 2 + 127) // 128 * 128
        tb = min(tb, half)
    tb = max((tb // 128) * 128, 128)     # lane/sublane aligned
    if batch <= tb:
        return batch                     # single full-batch block
    # TODO(synk): for very large 2H (>= ~10K f32 features) even 128-row blocks
    # exceed the budget; that regime needs feature-axis tiling with two-pass
    # InstanceNorm statistics.
    return tb


def binding_core_predictor_stacked(hidden_stacked, seq_mask, fc_weight, fc_bias):
    """hidden_stacked: [3, B, 2H] (a/b/pep, ideally bf16), seq_mask: [B, L],
    fc_weight: [L, 2H] (PyTorch nn.Linear layout), fc_bias: [L]."""
    three, B, two_h = hidden_stacked.shape
    assert three == 3
    L = seq_mask.shape[-1]

    budget, vmem_limit = _vmem_budget_and_limit()
    tb = _choose_batch_tile(B, two_h, L, hidden_stacked.dtype.itemsize, budget)
    grid = (pl.cdiv(B, tb),)
    # Note: a partial tail block (B % tb != 0) computes softmax on padded rows;
    # rows are fully independent and the clipped writeback discards them, so
    # this is benign -- do not "fix" it with a slower masked path.

    mask_i8 = (seq_mask != 0).astype(jnp.int8)            # tiny (B*L) op
    bias_row = fc_bias.reshape(1, L).astype(jnp.float32)  # [1, L]
    w_f32 = fc_weight.astype(jnp.float32)                 # [L, 2H], VMEM-resident

    in_bytes = hidden_stacked.dtype.itemsize
    cost = pl.CostEstimate(
        flops=2 * B * two_h * L + 10 * B * two_h + 8 * B * L,
        transcendentals=B * (L + 1),                       # exp + rsqrt
        bytes_accessed=(3 * B * two_h * in_bytes + B * L * (1 + 4)
                        + L * two_h * 4 + L * 4),
    )

    grid_spec = pltpu.PrefetchScalarGridSpec(
        num_scalar_prefetch=0,
        grid=grid,
        in_specs=[
            pl.BlockSpec((3, tb, two_h), lambda i: (0, i, 0)),  # stacked a/b/pep
            pl.BlockSpec((tb, L), lambda i: (i, 0)),            # seq_mask (int8)
            pl.BlockSpec((L, two_h), lambda i: (0, 0)),         # W   (resident)
            pl.BlockSpec((1, L), lambda i: (0, 0)),             # bias (resident)
        ],
        out_specs=pl.BlockSpec((tb, L), lambda i: (i, 0)),
    )

    out = pl.pallas_call(
        _binding_core_kernel,
        out_shape=jax.ShapeDtypeStruct((B, L), jnp.float32),
        grid_spec=grid_spec,
        compiler_params=pltpu.CompilerParams(
            dimension_semantics=("parallel",),
            vmem_limit_bytes=vmem_limit),
        cost_estimate=cost,
    )(hidden_stacked, mask_i8, w_f32, bias_row)

    # [B, L] -> [B, 1, L]: free metadata reshape (no transpose pass needed).
    return out.reshape(B, 1, L)


def binding_core_predictor(lstm_sum_hidden_a, lstm_sum_hidden_b,
                           lstm_sum_hidden_pep, seq_mask, fc_weight, fc_bias):
    """Compat shim matching the PyTorch forward() signature.

    Prefer having the producer emit the [3, B, 2H] stack (ideally bf16) and
    calling binding_core_predictor_stacked directly -- the jnp.stack below is
    an extra HBM pass over the bulk activations.
    """
    stacked = jnp.stack(
        [lstm_sum_hidden_a, lstm_sum_hidden_b, lstm_sum_hidden_pep], axis=0)
    return binding_core_predictor_stacked(stacked, seq_mask, fc_weight, fc_bias)


def _reference(a, b, p, seq_mask, fc_weight, fc_bias):
    """Pure-JAX reference of the PyTorch forward (exact arithmetic)."""
    x = (a + b + p).astype(jnp.float32)
    mean = jnp.mean(x, axis=-1, keepdims=True)
    var = jnp.mean((x - mean) ** 2, axis=-1, keepdims=True)
    xn = (x - mean) / jnp.sqrt(var + _EPS)
    logits = xn @ fc_weight.T + fc_bias
    masked = jnp.where(seq_mask != 0, logits, 0.0)
    sm = jax.nn.softmax(masked, axis=-1)
    return sm.reshape(sm.shape[0], 1, sm.shape[1])


if __name__ == "__main__":
    # Small, deterministic example consistent with the module's forward:
    # hidden_size=16 -> 2H=32 input features, max_seq_length=8, batch=4.
    B = 4
    hidden_size = 16
    two_h = hidden_size * 2
    max_seq_length = 8

    key = jax.random.PRNGKey(0)
    k_a, k_b, k_p, k_m, k_w, k_bias = jax.random.split(key, 6)

    a = jax.random.normal(k_a, (B, two_h), dtype=jnp.float32)
    b = jax.random.normal(k_b, (B, two_h), dtype=jnp.float32)
    pep = jax.random.normal(k_p, (B, two_h), dtype=jnp.float32)
    seq_mask = (jax.random.uniform(k_m, (B, max_seq_length)) > 0.3).astype(jnp.float32)

    # nn.Linear(2H, L) parameters in PyTorch layout: weight [L, 2H], bias [L].
    bound = 1.0 / jnp.sqrt(jnp.float32(two_h))
    fc_weight = jax.random.uniform(k_w, (max_seq_length, two_h),
                                   minval=-bound, maxval=bound, dtype=jnp.float32)
    fc_bias = jax.random.uniform(k_bias, (max_seq_length,),
                                 minval=-bound, maxval=bound, dtype=jnp.float32)

    # --- Optimized path: producer emits pre-stacked bf16 activations. -------
    hidden_stacked = jnp.stack([a, b, pep], axis=0).astype(jnp.bfloat16)
    out = binding_core_predictor_stacked(hidden_stacked, seq_mask, fc_weight, fc_bias)
    jax.block_until_ready(out)

    assert out.shape == (B, 1, max_seq_length)
    assert bool(jnp.all(jnp.isfinite(out)))
    # Exact-divide softmax: rows sum to 1 up to f32 rounding.
    assert bool(jnp.allclose(jnp.sum(out, axis=-1), 1.0, atol=1e-4))

    # Reference built from the SAME bf16-quantized inputs (upcast to f32) so
    # the comparison isolates the kernel, not the input quantization.
    a16 = hidden_stacked[0].astype(jnp.float32)
    b16 = hidden_stacked[1].astype(jnp.float32)
    p16 = hidden_stacked[2].astype(jnp.float32)
    ref_bf16 = _reference(a16, b16, p16, seq_mask, fc_weight, fc_bias)
    assert bool(jnp.allclose(out, ref_bf16, atol=1e-3, rtol=1e-3))

    # --- Compat path: original 3-tensor f32 signature, exact PyTorch math. ---
    out_f32 = binding_core_predictor(a, b, pep, seq_mask, fc_weight, fc_bias)
    jax.block_until_ready(out_f32)
    ref_f32 = _reference(a, b, pep, seq_mask, fc_weight, fc_bias)
    assert out_f32.shape == (B, 1, max_seq_length)
    assert bool(jnp.allclose(jnp.sum(out_f32, axis=-1), 1.0, atol=1e-4))
    assert bool(jnp.allclose(out_f32, ref_f32, atol=1e-3, rtol=1e-3))

    print("KERNEL_OK")
</pallas_src>

<mosaic_0001>
module attributes {stable_mosaic.version = 11 : i64} {
  func.func @_binding_core_kernel(%arg0: i32, %arg1: memref<3x4x32xbf16, #tpu.memory_space<vmem>>, %arg2: memref<4x8xi8, #tpu.memory_space<vmem>>, %arg3: memref<8x32xf32, #tpu.memory_space<vmem>>, %arg4: memref<1x8xf32, #tpu.memory_space<vmem>>, %arg5: memref<4x8xf32, #tpu.memory_space<vmem>>) attributes {dimension_semantics = [#tpu.dimension_semantics<parallel>], iteration_bounds = array<i64: 1>, scalar_prefetch = 0 : i64, scratch_operands = 0 : i64, tpu.core_type = #tpu.core_type<tc>, window_params = [{transform_indices = @transform_0, window_bounds = array<i64: 3, 4, 32>}, {transform_indices = @transform_1, window_bounds = array<i64: 4, 8>}, {pipeline_mode = #tpu.pipeline_mode<synchronous>, transform_indices = @transform_2, window_bounds = array<i64: 8, 32>}, {pipeline_mode = #tpu.pipeline_mode<synchronous>, transform_indices = @transform_3, window_bounds = array<i64: 1, 8>}, {transform_indices = @transform_4, window_bounds = array<i64: 4, 8>}]} {
    %c0 = arith.constant 0 : index
    %c0_0 = arith.constant 0 : index
    %c0_1 = arith.constant 0 : index
    %0 = vector.load %arg1[%c0, %c0_0, %c0_1] : memref<3x4x32xbf16, #tpu.memory_space<vmem>>, vector<1x4x32xbf16>
    %1 = vector.shape_cast %0 : vector<1x4x32xbf16> to vector<4x32xbf16>
    %2 = arith.extf %1 : vector<4x32xbf16> to vector<4x32xf32>
    %c1 = arith.constant 1 : index
    %c0_2 = arith.constant 0 : index
    %c0_3 = arith.constant 0 : index
    %3 = vector.load %arg1[%c1, %c0_2, %c0_3] : memref<3x4x32xbf16, #tpu.memory_space<vmem>>, vector<1x4x32xbf16>
    %4 = vector.shape_cast %3 : vector<1x4x32xbf16> to vector<4x32xbf16>
    %5 = arith.extf %4 : vector<4x32xbf16> to vector<4x32xf32>
    %6 = arith.addf %2, %5 : vector<4x32xf32>
    %c2 = arith.constant 2 : index
    %c0_4 = arith.constant 0 : index
    %c0_5 = arith.constant 0 : index
    %7 = vector.load %arg1[%c2, %c0_4, %c0_5] : memref<3x4x32xbf16, #tpu.memory_space<vmem>>, vector<1x4x32xbf16>
    %8 = vector.shape_cast %7 : vector<1x4x32xbf16> to vector<4x32xbf16>
    %9 = arith.extf %8 : vector<4x32xbf16> to vector<4x32xf32>
    %10 = arith.addf %6, %9 : vector<4x32xf32>
    %cst = arith.constant dense<0.000000e+00> : vector<4xf32>
    %11 = vector.multi_reduction <add>, %10, %cst [1] : vector<4x32xf32> to vector<4xf32>
    %12 = vector.shape_cast %11 : vector<4xf32> to vector<4x1xf32>
    %cst_6 = arith.constant 3.200000e+01 : f32
    %13 = vector.broadcast %cst_6 : f32 to vector<4x1xf32>
    %14 = arith.divf %12, %13 : vector<4x1xf32>
    %15 = vector.broadcast %14 : vector<4x1xf32> to vector<4x32xf32>
    %16 = arith.subf %10, %15 : vector<4x32xf32>
    %17 = arith.mulf %16, %16 : vector<4x32xf32>
    %cst_7 = arith.constant dense<0.000000e+00> : vector<4xf32>
    %18 = vector.multi_reduction <add>, %17, %cst_7 [1] : vector<4x32xf32> to vector<4xf32>
    %19 = vector.shape_cast %18 : vector<4xf32> to vector<4x1xf32>
    %cst_8 = arith.constant 3.200000e+01 : f32
    %20 = vector.broadcast %cst_8 : f32 to vector<4x1xf32>
    %21 = arith.divf %19, %20 : vector<4x1xf32>
    %cst_9 = arith.constant 9.99999974E-6 : f32
    %22 = vector.broadcast %cst_9 : f32 to vector<4x1xf32>
    %23 = arith.addf %21, %22 : vector<4x1xf32>
    %24 = math.rsqrt %23 : vector<4x1xf32>
    %25 = vector.broadcast %24 : vector<4x1xf32> to vector<4x32xf32>
    %26 = arith.mulf %16, %25 : vector<4x32xf32>
    %c0_10 = arith.constant 0 : index
    %c0_11 = arith.constant 0 : index
    %27 = vector.load %arg3[%c0_10, %c0_11] : memref<8x32xf32, #tpu.memory_space<vmem>>, vector<8x32xf32>
    %cst_12 = arith.constant dense<0.000000e+00> : vector<4x8xf32>
    %28 = tpu.matmul %26, %27, %cst_12 {dimension_numbers = #tpu.dot_dimension_numbers<[1], [1], [0], [0], [0, 0, 1, 0], [], []>} : vector<4x32xf32>, vector<8x32xf32>, vector<4x8xf32> -> vector<4x8xf32>
    %c0_13 = arith.constant 0 : index
    %c0_14 = arith.constant 0 : index
    %29 = vector.load %arg4[%c0_13, %c0_14] : memref<1x8xf32, #tpu.memory_space<vmem>>, vector<1x8xf32>
    %30 = vector.broadcast %29 : vector<1x8xf32> to vector<4x8xf32>
    %31 = arith.addf %28, %30 : vector<4x8xf32>
    %c0_15 = arith.constant 0 : index
    %c0_16 = arith.constant 0 : index
    %32 = vector.load %arg2[%c0_15, %c0_16] : memref<4x8xi8, #tpu.memory_space<vmem>>, vector<4x8xi8>
    %c0_i8 = arith.constant 0 : i8
    %33 = vector.broadcast %c0_i8 : i8 to vector<4x8xi8>
    %34 = arith.cmpi ne, %32, %33 : vector<4x8xi8>
    %cst_17 = arith.constant 0.000000e+00 : f32
    %35 = vector.broadcast %cst_17 : f32 to vector<4x8xf32>
    %36 = arith.select %34, %31, %35 : vector<4x8xi1>, vector<4x8xf32>
    %cst_18 = arith.constant dense<0xFF800000> : vector<4xf32>
    %37 = vector.multi_reduction <maximumf>, %36, %cst_18 [1] : vector<4x8xf32> to vector<4xf32>
    %38 = vector.shape_cast %37 : vector<4xf32> to vector<4x1xf32>
    %39 = vector.broadcast %38 : vector<4x1xf32> to vector<4x8xf32>
    %40 = arith.subf %36, %39 : vector<4x8xf32>
    %41 = math.exp %40 : vector<4x8xf32>
    %cst_19 = arith.constant dense<0.000000e+00> : vector<4xf32>
    %42 = vector.multi_reduction <add>, %41, %cst_19 [1] : vector<4x8xf32> to vector<4xf32>
    %43 = vector.shape_cast %42 : vector<4xf32> to vector<4x1xf32>
    %44 = vector.broadcast %43 : vector<4x1xf32> to vector<4x8xf32>
    %45 = arith.divf %41, %44 : vector<4x8xf32>
    %c0_20 = arith.constant 0 : index
    %c0_21 = arith.constant 0 : index
    %46 = vector.load %arg5[%c0_20, %c0_21] : memref<4x8xf32, #tpu.memory_space<vmem>>, vector<4x8xf32>
    tpu.vector_store %arg5[%c0_20, %c0_21], %45 {strides = array<i32>} : memref<4x8xf32, #tpu.memory_space<vmem>>, vector<4x8xf32>,
    return
  }
  func.func @transform_0(%arg0: i32) -> (i32, i32, i32) {
    %c0_i32 = arith.constant 0 : i32
    %c0_i32_0 = arith.constant 0 : i32
    %c0_i32_1 = arith.constant 0 : i32
    return %c0_i32, %arg0, %c0_i32_0 : i32, i32, i32
  }
  func.func @transform_1(%arg0: i32) -> (i32, i32) {
    %c0_i32 = arith.constant 0 : i32
    %c0_i32_0 = arith.constant 0 : i32
    return %arg0, %c0_i32 : i32, i32
  }
  func.func @transform_2(%arg0: i32) -> (i32, i32) {
    %c0_i32 = arith.constant 0 : i32
    %c0_i32_0 = arith.constant 0 : i32
    %c0_i32_1 = arith.constant 0 : i32
    return %c0_i32, %c0_i32_0 : i32, i32
  }
  func.func @transform_3(%arg0: i32) -> (i32, i32) {
    %c0_i32 = arith.constant 0 : i32
    %c0_i32_0 = arith.constant 0 : i32
    %c0_i32_1 = arith.constant 0 : i32
    return %c0_i32, %c0_i32_0 : i32, i32
  }
  func.func @transform_4(%arg0: i32) -> (i32, i32) {
    %c0_i32 = arith.constant 0 : i32
    %c0_i32_0 = arith.constant 0 : i32
    return %arg0, %c0_i32 : i32, i32
  }
}

</mosaic_0001>

<bundles_post_ra>
// kernel: tpu_custom_call.1
= control target key start
LH: loop header
LB: loop body
LE: loop exit
PB: predicated region body
PF: predicated region fallthrough
CT: control target
= control target key end

     0   :  { %9 = vsyncpa [#allocation3], 0  ;;  %s365_s0 = inlined_call_operand.hbm [shape: bf16[3,4,32], index: 0, kind: input, shape index: {}]   ;;  %s366_s1 = inlined_call_operand.vmem [shape: s8[4,8], index: 1, kind: input, shape index: {}]   ;;  %s367_s2 = inlined_call_operand.hbm [shape: f32[8,32], index: 2, kind: input, shape index: {}]   ;;  %s368_s3 = inlined_call_operand.vmem [shape: f32[1,8], index: 3, kind: input, shape index: {}]   ;;  %s369_s4 = inlined_call_operand.hbm [shape: f32[4,8], index: 4, kind: output, shape index: {}]  }
   0x1   :  { %10 = vsyncpa [#allocation6], 0 }
   0x2   :  { %11 = vsyncpa [#allocation4], 0  ;;  %s287_s15 = smov [#allocation2]   ;;  %s215_s19 = scalar_lea.hbm %s365_s0, 96 }
   0x3   :  { %s17_s16 = sshll.u32 %s287_s15, 4  ;;  %p216_p0 = scmp.ne.s32.totalorder %s365_s0, %s215_s19  ;;  %s18_s16 = int_to_ptr.vmem [resolvable:$true] %s17_s16 }
   0x4   :  { %p219_p1 = scmp.lt.u32.totalorder %s215_s19, %s365_s0 }
   0x6   :  { %p221_p2 = pnand %p219_p1, %p216_p0 }
   0x8   :  { %224 = shalt.err (!%p221_p2)
}
   0x9   :  { %s225_s24 = scalar_lea.vmem %s18_s16, 96  ;;  %p230_p4 = scmp.lt.s32.totalorder %s18_s16, %s18_s16 }
   0xa   :  { %p226_p3 = scmp.ne.s32.totalorder %s18_s16, %s225_s24  ;;  %p231_p5 = scmp.lt.s32.totalorder %s225_s24, %s225_s24 }
   0xc   :  { %p232_p6 = por %p231_p5, %p230_p4 }
   0xe   :  { %p233_p7 = pnand %p232_p6, %p226_p3 }
  0x10   :  { %236 = shalt.err (!%p233_p7)
}
  0x11   :  { %s288_s25 = smov 32   ;;  %s289_s26 = smov 2  }
  0x12   :  { %23 = dma.hbm_to_vmem [thread:$0]  %s365_s0, 96, %s18_s16, [#allocation3], %s288_s25, %s288_s25, %s289_s26  }
  0x13   :  { %s290_s29 = smov [#allocation5]   ;;  %s237_s7 = scalar_lea.hbm %s367_s2, 128 }
  0x14   :  { %s32_s30 = sshll.u32 %s290_s29, 4  ;;  %p238_p8 = scmp.ne.s32.totalorder %s367_s2, %s237_s7  ;;  %s33_s30 = int_to_ptr.vmem [resolvable:$true] %s32_s30 }
  0x15   :  { %p241_p9 = scmp.lt.u32.totalorder %s237_s7, %s367_s2 }
  0x17   :  { %p243_p10 = pnand %p241_p9, %p238_p8 }
  0x19   :  { %246 = shalt.err (!%p243_p10)
}
  0x1a   :  { %s247_s12 = scalar_lea.vmem %s33_s30, 128  ;;  %p252_p12 = scmp.lt.s32.totalorder %s33_s30, %s33_s30 }
  0x1b   :  { %p248_p11 = scmp.ne.s32.totalorder %s33_s30, %s247_s12  ;;  %p253_p13 = scmp.lt.s32.totalorder %s247_s12, %s247_s12 }
  0x1d   :  { %p254_p0 = por %p253_p13, %p252_p12 }
  0x1f   :  { %p255_p1 = pnand %p254_p0, %p248_p11 }
  0x21   :  { %258 = shalt.err (!%p255_p1)
}
  0x22   :  { %35 = dma.hbm_to_vmem [thread:$0]  %s367_s2, 128, %s33_s30, [#allocation6]  }
  0x23   :  { %281 = dma.done.wait [#allocation3], 96  }
  0x24   :  { %282 = vsyncadd [#allocation3], 4294967200 }
  0x25   :  { %283 = dma.done.wait [#allocation6], 128  }
  0x26   :  { %284 = vsyncadd [#allocation6], 4294967168  ;;  %v46_v0 = vld [vmem:[#allocation2] sm:$0x3]  ;;  %v49_v1 = vld [vmem:[#allocation2 + $0x2] sm:$0x3] }
  0x27   :  { %v53_v2 = vld [vmem:[#allocation2 + $0x4] sm:$0x3]  ;;  %v47_v3 = vunpack.c.l.bf16 %v46_v0  ;;  %v50_v4 = vunpack.c.l.bf16 %v49_v1  ;;  %vm56_vm0 = vcmask 257024   ;;  %v71_v14 = vld [vmem:[#allocation5] sm:$0xff]  ;;  %vm79_vm1 = vcmask 261120  }
  0x28   :  { %v54_v5 = vunpack.c.l.bf16 %v53_v2  ;;  %v291_v15 = vmov 0.0   ;;  %vm292_vm2 = vmmov 0   ;;  %v156_v21 = vld [vmem:[%s366_s1] sm:$0x1]  ;;  %v293_v22 = vmov 0   ;;  %s294_s1 = smov [#allocation7]  }
  0x29   :  { %v51_v6 = vadd.f32 %v50_v4, %v47_v3  ;;  %196 = vmatprep.subr.mxu0 %v291_v15  ;;  %198 = vmatprep.mubr.msk.f32.mxu0 %vm292_vm2, %v291_v15  ;;  %vm157_vm3 = vnez %v156_v21  ;;  %v191_v25 = vld [vmem:[%s368_s3] ss:$0 sm:$0xff]  ;;  %vm162_vm5 = vcmask 60416   ;;  %s181_s3 = sshll.u32 %s294_s1, 4  ;;  %s182_s3 = int_to_ptr.vmem [resolvable:$true] %s181_s3 }
  0x2a   :  { %197 = vmatpush3.xpose.msk.msra.mxu0 %vm79_vm1, %v71_v14  ;;  %v158_v23 = vsel %vm157_vm3, 16843009, %v293_v22  ;;  %s259_s17 = scalar_lea.vmem %s182_s3, 64  ;;  %p264_p3 = scmp.lt.s32.totalorder %s182_s3, %s182_s3 }
  0x2b   :  { %v55_v7 = vadd.f32 %v54_v5, %v51_v6  ;;  %v159_v24 = vunpack.c.0.s8 %v158_v23  ;;  %p260_p2 = scmp.ne.s32.totalorder %s182_s3, %s259_s17  ;;  %p265_p4 = scmp.lt.s32.totalorder %s259_s17, %s259_s17 }
  0x2d   :  { %v57_v8 = vsel %vm56_vm0, %v55_v7, 0.0  ;;  %vm160_vm4 = vcmp.ne.s32.totalorder %v159_v24, 0  ;;  %p266_p5 = por %p265_p4, %p264_p3 }
  0x2e   :  { %58 = vadd.xlane.f32.xlu0 %v57_v8 }
  0x2f   :  { %p267_p6 = pnand %p266_p5, %p260_p2 }
  0xbb   :  { %v59_v9 = vpop.xlane.xlu0 %58 }
  0xbc   :  { %v61_v10 = vmul.f32 0.03125, %v59_v9 }
  0xbe   :  { %v62_v11 = vsub.f32 %v55_v7, %v61_v10 }
  0xc0   :  { %v63_v12 = vmul.f32 %v62_v11, %v62_v11 }
  0xc2   :  { %v64_v13 = vsel %vm56_vm0, %v63_v12, 0.0 }
  0xc3   :  { %65 = vadd.xlane.f32.xlu0 %v64_v13 }
 0x150   :  { %v66_v16 = vpop.xlane.xlu0 %65 }
 0x151   :  { %v67_v17 = vmul.f32 0.03125, %v66_v16 }
 0x153   :  { %v68_v18 = vadd.f32 1e-05, %v67_v17 }
 0x155   :  { %209 = vrsqrt.f32 %v68_v18 }
 0x15f   :  { %v210_v19 = vpop.eup %209 }
 0x160   :  { %v70_v20 = vmul.f32 %v210_v19, %v62_v11 }
 0x162   :  { %199 = vmatmul.mubr.msk.f32.vlgmr.msra.gmra.mrb[0].mxu0 %vm79_vm1, %v70_v20 }
 0x235   :  { %v152_v26 = vpop.f32.mrb[0].mxu0 }
 0x236   :  { %v153_v27 = vadd.f32 %v191_v25, %v152_v26  ;;  %v200_v28 = vpop.f32.mrb[1].mxu0 }
 0x238   :  { %v161_v29 = vsel %vm160_vm4, %v153_v27, 0.0 }
 0x239   :  { %v163_v30 = vsel %vm162_vm5, %v161_v29, -inf }
 0x23a   :  { %164 = vmax.xlane.f32.xlu1 %v163_v30 }
 0x2c7   :  { %v165_v31 = vpop.xlane.xlu1 %164 }
 0x2c8   :  { %v166_v32 = vsub.f32 %v161_v29, %v165_v31 }
 0x2ca   :  { %v167_v33 = vmul.f32 1.442695, %v166_v32 }
 0x2cc   :  { %211 = vpow2.f32 %v167_v33 }
 0x2d6   :  { %v212_v34 = vpop.eup %211 }
 0x2d7   :  { %v169_v35 = vsel %vm162_vm5, %v212_v34, 0.0 }
 0x2d8   :  { %170 = vadd.xlane.f32.xlu1 %v169_v35 }
 0x365   :  { %v171_v36 = vpop.xlane.xlu1 %170 }
 0x366   :  { %213 = vrcp.f32 %v171_v36 }
 0x370   :  { %v214_v37 = vpop.eup %213 }
 0x371   :  { %v173_v38 = vmul.f32 %v214_v37, %v212_v34 }
 0x373   :  { %174 = vst.msk [vmem:[#allocation7] sm:$0xf] %vm162_vm5, %v173_v38 }
 0x374   :  { %270 = shalt.err (!%p267_p6)
}
 0x375   :  { %s271_s20 = scalar_lea.hbm %s369_s4, 64 }
 0x376   :  { %p272_p7 = scmp.ne.s32.totalorder %s369_s4, %s271_s20  ;;  %p275_p8 = scmp.lt.u32.totalorder %s271_s20, %s369_s4 }
 0x378   :  { %p277_p9 = pnand %p275_p8, %p272_p7 }
 0x37a   :  { %280 = shalt.err (!%p277_p9)
}
 0x37b   :  { %184 = dma.vmem_to_hbm [thread:$0]  %s182_s3, 64, %s369_s4, [#allocation4]  }
 0x37c   :  { %285 = dma.done.wait [#allocation4], 64  }
 0x37d   :  { %286 = vsyncadd [#allocation4], 4294967232 }
 0x37e   :  { %188 = vsyncpa [#allocation3], 1 }
 0x37f   :  { %189 = vsyncpa [#allocation6], 1 }
 0x380   :  { %190 = vsyncpa [#allocation4], 1 }

</bundles_post_ra>
